<compile_context>
chip_gen: v7x
topology: tpu7x:2x2x1
jax: 0.10.0
libtpu: 0.0.40
codegen_flags: <defaults>
</compile_context>

<pallas_src>
import jax
import jax.numpy as jnp
from jax.experimental import pallas as pl
from jax.experimental.pallas import tpu as pltpu

_EPS = 1e-8


def _make_kernel(n_total, n_t, tiles_per_core, needs_mask, d_chunk, n_chunks):
    """Build the kernel body with static shape/tiling parameters baked in."""

    def kernel(a_ref, p_ref, n_ref, pos_out_ref, neg_out_ref, pos_acc, neg_acc):
        ni = pl.program_id(2)

        # Initialize the running lane-wide accumulators on the first N tile of
        # every (core, batch-tile) slice of the grid.
        @pl.when(ni == 0)
        def _init():
            pos_acc[...] = jnp.full(pos_acc.shape, jnp.inf, dtype=jnp.float32)
            neg_acc[...] = jnp.full(neg_acc.shape, -jnp.inf, dtype=jnp.float32)

        b_t = a_ref.shape[0]
        n_lanes = a_ref.shape[2]

        def chunk_sq(d0, size):
            # Per-chunk upcast: never materializes a full-tile f32 copy of the
            # (possibly bf16) inputs; temporaries stay chunk-sized.
            a = a_ref[:, pl.ds(d0, size), :].astype(jnp.float32)
            dp = a - p_ref[:, pl.ds(d0, size), :].astype(jnp.float32)
            dn = a - n_ref[:, pl.ds(d0, size), :].astype(jnp.float32)
            return jnp.sum(dp * dp, axis=1), jnp.sum(dn * dn, axis=1)

        if n_chunks == 1:
            pos_sq, neg_sq = chunk_sq(0, d_chunk)
        else:
            def body(i, carry):
                ps, ns = carry
                d0 = pl.multiple_of(i * d_chunk, d_chunk)
                pc, nc = chunk_sq(d0, d_chunk)
                return ps + pc, ns + nc

            init = (jnp.zeros((b_t, n_lanes), jnp.float32),
                    jnp.zeros((b_t, n_lanes), jnp.float32))
            pos_sq, neg_sq = jax.lax.fori_loop(
                0, n_chunks, body, init,
                unroll=True if n_chunks <= 16 else 8)

        if needs_mask:
            # Only ragged / over-covered tiles pay the iota + compare + where;
            # full tiles take the cheap branch.
            g = pl.program_id(0) * tiles_per_core + ni      # global N tile idx
            tile_start = g * n_t
            is_full = tile_start + n_t <= n_total

            @pl.when(is_full)
            def _acc_full():
                pos_acc[...] = jnp.minimum(pos_acc[...], pos_sq)
                neg_acc[...] = jnp.maximum(neg_acc[...], neg_sq)

            @pl.when(jnp.logical_not(is_full))
            def _acc_masked():
                lane = jax.lax.broadcasted_iota(jnp.int32, pos_sq.shape, 1)
                valid = (tile_start + lane) < n_total
                # NaN-safe: where() selects by mask regardless of garbage lanes.
                pos_acc[...] = jnp.minimum(
                    pos_acc[...], jnp.where(valid, pos_sq, jnp.inf))
                neg_acc[...] = jnp.maximum(
                    neg_acc[...], jnp.where(valid, neg_sq, -jnp.inf))
        else:
            pos_acc[...] = jnp.minimum(pos_acc[...], pos_sq)
            neg_acc[...] = jnp.maximum(neg_acc[...], neg_sq)

        # Finalize: one cross-lane reduce per (core, batch-tile).  sqrt/log1p
        # happen in the wrapper on <= 2*B scalars (min/max before sqrt is
        # exact since sqrt is monotone).
        @pl.when(ni == pl.num_programs(2) - 1)
        def _finalize():
            pos_out_ref[...] = jnp.min(
                pos_acc[...], axis=1, keepdims=True).reshape(pos_out_ref.shape)
            neg_out_ref[...] = jnp.max(
                neg_acc[...], axis=1, keepdims=True).reshape(neg_out_ref.shape)

    return kernel


def _vmem_budget_bytes():
    """Generation-dependent (tile budget, scoped vmem limit) in bytes."""
    cap = None
    try:
        cap = getattr(pltpu.get_tpu_info(), "vmem_capacity_bytes", None)
    except Exception:
        cap = None
    if cap is None:
        cap = 64 * 1024 * 1024  # be conservative if the query is unavailable
    if cap >= 96 * 1024 * 1024:
        # v5e / v6e: 128 MiB physical VMEM -> big tiles amortize per-step cost.
        return 56 * 1024 * 1024, 96 * 1024 * 1024
    # v7x: only 64 MiB physical per TensorCore -> stay well under it.
    return 36 * 1024 * 1024, 48 * 1024 * 1024


def _choose_tiles(B, D, N, itemsize, budget_bytes, max_n_tile=None):
    """Pick (b_t, n_t, d_chunk, n_cores)."""
    b_t = B if B <= 8 else 8                 # keeps the output block layout legal
    d_chunk = 8 if (D > 8 and D % 8 == 0) else D

    def footprint(nt):
        inputs = 3 * 2 * b_t * D * nt * itemsize      # 3 inputs, double-buffered
        acc = 2 * b_t * nt * 4                        # running min/max (f32)
        temps = 4 * b_t * d_chunk * nt * 4            # per-chunk f32 temporaries
        carries = 4 * b_t * nt * 4                    # pos_sq/neg_sq + mask temps
        return inputs + acc + temps + carries

    if N <= 128 or footprint(N) <= budget_bytes:
        n_t = N                                       # single full-N, unmasked step
    else:
        per_lane = footprint(1)
        n_t = max(128, (budget_bytes // per_lane) // 128 * 128)
    if max_n_tile is not None:
        n_t = min(n_t, max_n_tile)

    # Megacore (v7x): if there is only one B tile, split N over a leading
    # 2-way core-parallel axis so both TensorCores have work.  On 1-TC chips
    # this just adds one cheap grid iteration.
    n_blocks_B = pl.cdiv(B, b_t)
    if n_blocks_B == 1 and N >= 256 and pl.cdiv(N, n_t) < 2:
        n_t = min(n_t, pl.cdiv(pl.cdiv(N, 2), 128) * 128)
    n_blocks_N = pl.cdiv(N, n_t)
    n_cores = 2 if (n_blocks_B == 1 and n_blocks_N >= 2) else 1
    return b_t, n_t, d_chunk, n_cores


def hard_triplet_loss_ratio(anchor, positive, negative, *, max_n_tile=None):
    """anchor/positive/negative: (B, D, N) float arrays. Returns scalar f32 loss."""
    assert anchor.shape == positive.shape == negative.shape
    B, D, N = anchor.shape
    itemsize = jnp.dtype(anchor.dtype).itemsize

    budget, vmem_limit = _vmem_budget_bytes()
    b_t, n_t, d_chunk, n_cores = _choose_tiles(
        B, D, N, itemsize, budget, max_n_tile)

    n_blocks_B = pl.cdiv(B, b_t)
    n_blocks_N = pl.cdiv(N, n_t)
    tiles_per_core = pl.cdiv(n_blocks_N, n_cores)
    covered = n_cores * tiles_per_core * n_t
    needs_mask = covered != N
    n_chunks = D // d_chunk

    kernel = _make_kernel(N, n_t, tiles_per_core, needs_mask, d_chunk, n_chunks)

    if n_cores * tiles_per_core > n_blocks_N:
        # Odd tile count split over 2 cores: the trailing core revisits the
        # last real tile (clamped index); its lanes are fully masked.
        def in_idx(c, bi, ni):
            return (bi, 0, jnp.minimum(c * tiles_per_core + ni, n_blocks_N - 1))
    else:
        def in_idx(c, bi, ni):
            return (bi, 0, c * tiles_per_core + ni)

    in_spec = pl.BlockSpec((b_t, D, n_t), in_idx)
    out_spec = pl.BlockSpec((1, b_t, 1), lambda c, bi, ni: (c, bi, 0))

    grid = (n_cores, n_blocks_B, tiles_per_core)

    cost = pl.CostEstimate(
        flops=6 * B * D * N + 4 * B * N,
        transcendentals=0,
        bytes_accessed=3 * B * D * N * itemsize + 2 * n_cores * B * 4,
    )

    # Note: a ragged last B tile (B not a multiple of b_t) computes its extra
    # rows on uninitialized data; Pallas drops those out-of-bounds output rows
    # on writeback, so the wrapper only ever sees the B valid rows.
    pos_min_sq, neg_max_sq = pl.pallas_call(
        kernel,
        out_shape=(
            jax.ShapeDtypeStruct((n_cores, B, 1), jnp.float32),
            jax.ShapeDtypeStruct((n_cores, B, 1), jnp.float32),
        ),
        grid_spec=pltpu.PrefetchScalarGridSpec(
            num_scalar_prefetch=0,
            grid=grid,
            in_specs=[in_spec, in_spec, in_spec],
            out_specs=[out_spec, out_spec],
            scratch_shapes=[
                pltpu.VMEM((b_t, n_t), jnp.float32),   # running min of pos dist^2
                pltpu.VMEM((b_t, n_t), jnp.float32),   # running max of neg dist^2
            ],
        ),
        compiler_params=pltpu.CompilerParams(
            dimension_semantics=("parallel", "parallel", "arbitrary"),
            vmem_limit_bytes=vmem_limit,
        ),
        cost_estimate=cost,
    )(anchor, positive, negative)

    # Tiny finalization over at most 2*B scalars: combine the per-core partial
    # min/max, then sqrt (monotone => exact), ratio, log1p, mean.
    hp = jnp.sqrt(jnp.min(pos_min_sq[:, :, 0], axis=0))   # (B,)
    hn = jnp.sqrt(jnp.max(neg_max_sq[:, :, 0], axis=0))   # (B,)
    return jnp.mean(jnp.log1p(hp / (hn + _EPS)))


def _reference(anchor, positive, negative):
    a = anchor.astype(jnp.float32)
    p = positive.astype(jnp.float32)
    n = negative.astype(jnp.float32)
    pos_dist = jnp.sqrt(jnp.sum((a - p) ** 2, axis=1))
    neg_dist = jnp.sqrt(jnp.sum((a - n) ** 2, axis=1))
    hp = jnp.min(pos_dist, axis=1)
    hn = jnp.max(neg_dist, axis=1)
    return jnp.mean(jnp.log1p(hp / (hn + _EPS)))


if __name__ == "__main__":
    key = jax.random.PRNGKey(0)

    def run_case(B, D, N, dtype=jnp.float32, max_n_tile=None, idx=0):
        ka, kp, kn = jax.random.split(jax.random.fold_in(key, idx), 3)
        anchor = jax.random.normal(ka, (B, D, N), dtype=jnp.float32).astype(dtype)
        positive = jax.random.normal(kp, (B, D, N), dtype=jnp.float32).astype(dtype)
        negative = jax.random.normal(kn, (B, D, N), dtype=jnp.float32).astype(dtype)
        loss = hard_triplet_loss_ratio(anchor, positive, negative,
                                       max_n_tile=max_n_tile)
        jax.block_until_ready(loss)
        ref = _reference(anchor, positive, negative)
        assert jnp.allclose(loss, ref, rtol=1e-4, atol=1e-5), (
            B, D, N, dtype, max_n_tile, loss, ref)

    # 1) Lane-aligned N, single tile, no masking, single-core axis.
    run_case(2, 32, 128, idx=0)
    # 2) Single-B-tile + larger N: forced 2-way core split of the N axis with a
    #    ragged (masked) last tile.
    run_case(2, 32, 384, idx=1)
    # 3) Force small N tiles: multi-tile reduction over N, core split with an
    #    odd tile count (exercises the clamped + fully-masked revisit tile).
    run_case(2, 32, 384, max_n_tile=128, idx=2)
    # 4) B > 8 and not a multiple of 8: ragged last B tile (dropped OOB rows).
    run_case(10, 16, 256, idx=3)
    # 5) bf16 inputs: per-chunk upcast path, f32 accumulation.
    run_case(2, 32, 384, dtype=jnp.bfloat16, idx=4)

    print("KERNEL_OK")
</pallas_src>

<mosaic_0001>
module attributes {stable_mosaic.version = 11 : i64} {
  func.func @kernel(%arg0: i32, %arg1: i32, %arg2: i32, %arg3: memref<2x32x128xf32, #tpu.memory_space<vmem>>, %arg4: memref<2x32x128xf32, #tpu.memory_space<vmem>>, %arg5: memref<2x32x128xf32, #tpu.memory_space<vmem>>, %arg6: memref<1x2x1xf32, #tpu.memory_space<vmem>>, %arg7: memref<1x2x1xf32, #tpu.memory_space<vmem>>, %arg8: memref<2x128xf32, #tpu.memory_space<vmem>>, %arg9: memref<2x128xf32, #tpu.memory_space<vmem>>) attributes {dimension_semantics = [#tpu.dimension_semantics<parallel>, #tpu.dimension_semantics<parallel>, #tpu.dimension_semantics<arbitrary>], iteration_bounds = array<i64: 1, 1, 1>, scalar_prefetch = 0 : i64, scratch_operands = 2 : i64, tpu.core_type = #tpu.core_type<tc>, window_params = [{transform_indices = @transform_0, window_bounds = array<i64: 2, 32, 128>}, {transform_indices = @transform_1, window_bounds = array<i64: 2, 32, 128>}, {transform_indices = @transform_2, window_bounds = array<i64: 2, 32, 128>}, {transform_indices = @transform_3, window_bounds = array<i64: 1, 2, 1>}, {transform_indices = @transform_4, window_bounds = array<i64: 1, 2, 1>}]} {
    %c0_i32 = arith.constant 0 : i32
    %0 = arith.cmpi eq, %arg2, %c0_i32 : i32
    %1 = arith.extui %0 : i1 to i32
    %c0_i32_0 = arith.constant 0 : i32
    %2 = arith.cmpi ne, %1, %c0_i32_0 : i32
    scf.if %2 {
      %cst_47 = arith.constant 0x7F800000 : f32
      %78 = vector.broadcast %cst_47 : f32 to vector<2x128xf32>
      %c0_48 = arith.constant 0 : index
      %c0_49 = arith.constant 0 : index
      %79 = vector.load %arg8[%c0_48, %c0_49] : memref<2x128xf32, #tpu.memory_space<vmem>>, vector<2x128xf32>
      tpu.vector_store %arg8[%c0_48, %c0_49], %78 {strides = array<i32>} : memref<2x128xf32, #tpu.memory_space<vmem>>, vector<2x128xf32>,
      %cst_50 = arith.constant 0xFF800000 : f32
      %80 = vector.broadcast %cst_50 : f32 to vector<2x128xf32>
      %c0_51 = arith.constant 0 : index
      %c0_52 = arith.constant 0 : index
      %81 = vector.load %arg9[%c0_51, %c0_52] : memref<2x128xf32, #tpu.memory_space<vmem>>, vector<2x128xf32>
      tpu.vector_store %arg9[%c0_51, %c0_52], %80 {strides = array<i32>} : memref<2x128xf32, #tpu.memory_space<vmem>>, vector<2x128xf32>,
    } else {
    }
    %cst = arith.constant 0.000000e+00 : f32
    %3 = vector.broadcast %cst : f32 to vector<2x128xf32>
    %cst_1 = arith.constant 0.000000e+00 : f32
    %4 = vector.broadcast %cst_1 : f32 to vector<2x128xf32>
    %c0_i32_2 = arith.constant 0 : i32
    %c8_i32 = arith.constant 8 : i32
    %5 = arith.muli %c0_i32_2, %c8_i32 : i32
    %6 = tpu.assume_multiple %5, 8 : i32
    %c0 = arith.constant 0 : index
    %7 = arith.index_cast %6 : i32 to index
    %c0_3 = arith.constant 0 : index
    %8 = vector.load %arg3[%c0, %7, %c0_3] : memref<2x32x128xf32, #tpu.memory_space<vmem>>, vector<2x8x128xf32>
    %c0_4 = arith.constant 0 : index
    %9 = arith.index_cast %6 : i32 to index
    %c0_5 = arith.constant 0 : index
    %10 = vector.load %arg4[%c0_4, %9, %c0_5] : memref<2x32x128xf32, #tpu.memory_space<vmem>>, vector<2x8x128xf32>
    %11 = arith.subf %8, %10 : vector<2x8x128xf32>
    %c0_6 = arith.constant 0 : index
    %12 = arith.index_cast %6 : i32 to index
    %c0_7 = arith.constant 0 : index
    %13 = vector.load %arg5[%c0_6, %12, %c0_7] : memref<2x32x128xf32, #tpu.memory_space<vmem>>, vector<2x8x128xf32>
    %14 = arith.subf %8, %13 : vector<2x8x128xf32>
    %15 = arith.mulf %11, %11 : vector<2x8x128xf32>
    %cst_8 = arith.constant dense<0.000000e+00> : vector<2x128xf32>
    %16 = vector.multi_reduction <add>, %15, %cst_8 [1] : vector<2x8x128xf32> to vector<2x128xf32>
    %17 = arith.mulf %14, %14 : vector<2x8x128xf32>
    %cst_9 = arith.constant dense<0.000000e+00> : vector<2x128xf32>
    %18 = vector.multi_reduction <add>, %17, %cst_9 [1] : vector<2x8x128xf32> to vector<2x128xf32>
    %19 = arith.addf %3, %16 : vector<2x128xf32>
    %20 = arith.addf %4, %18 : vector<2x128xf32>
    %c1_i32 = arith.constant 1 : i32
    %c8_i32_10 = arith.constant 8 : i32
    %21 = arith.muli %c1_i32, %c8_i32_10 : i32
    %22 = tpu.assume_multiple %21, 8 : i32
    %c0_11 = arith.constant 0 : index
    %23 = arith.index_cast %22 : i32 to index
    %c0_12 = arith.constant 0 : index
    %24 = vector.load %arg3[%c0_11, %23, %c0_12] : memref<2x32x128xf32, #tpu.memory_space<vmem>>, vector<2x8x128xf32>
    %c0_13 = arith.constant 0 : index
    %25 = arith.index_cast %22 : i32 to index
    %c0_14 = arith.constant 0 : index
    %26 = vector.load %arg4[%c0_13, %25, %c0_14] : memref<2x32x128xf32, #tpu.memory_space<vmem>>, vector<2x8x128xf32>
    %27 = arith.subf %24, %26 : vector<2x8x128xf32>
    %c0_15 = arith.constant 0 : index
    %28 = arith.index_cast %22 : i32 to index
    %c0_16 = arith.constant 0 : index
    %29 = vector.load %arg5[%c0_15, %28, %c0_16] : memref<2x32x128xf32, #tpu.memory_space<vmem>>, vector<2x8x128xf32>
    %30 = arith.subf %24, %29 : vector<2x8x128xf32>
    %31 = arith.mulf %27, %27 : vector<2x8x128xf32>
    %cst_17 = arith.constant dense<0.000000e+00> : vector<2x128xf32>
    %32 = vector.multi_reduction <add>, %31, %cst_17 [1] : vector<2x8x128xf32> to vector<2x128xf32>
    %33 = arith.mulf %30, %30 : vector<2x8x128xf32>
    %cst_18 = arith.constant dense<0.000000e+00> : vector<2x128xf32>
    %34 = vector.multi_reduction <add>, %33, %cst_18 [1] : vector<2x8x128xf32> to vector<2x128xf32>
    %35 = arith.addf %19, %32 : vector<2x128xf32>
    %36 = arith.addf %20, %34 : vector<2x128xf32>
    %c2_i32 = arith.constant 2 : i32
    %c8_i32_19 = arith.constant 8 : i32
    %37 = arith.muli %c2_i32, %c8_i32_19 : i32
    %38 = tpu.assume_multiple %37, 8 : i32
    %c0_20 = arith.constant 0 : index
    %39 = arith.index_cast %38 : i32 to index
    %c0_21 = arith.constant 0 : index
    %40 = vector.load %arg3[%c0_20, %39, %c0_21] : memref<2x32x128xf32, #tpu.memory_space<vmem>>, vector<2x8x128xf32>
    %c0_22 = arith.constant 0 : index
    %41 = arith.index_cast %38 : i32 to index
    %c0_23 = arith.constant 0 : index
    %42 = vector.load %arg4[%c0_22, %41, %c0_23] : memref<2x32x128xf32, #tpu.memory_space<vmem>>, vector<2x8x128xf32>
    %43 = arith.subf %40, %42 : vector<2x8x128xf32>
    %c0_24 = arith.constant 0 : index
    %44 = arith.index_cast %38 : i32 to index
    %c0_25 = arith.constant 0 : index
    %45 = vector.load %arg5[%c0_24, %44, %c0_25] : memref<2x32x128xf32, #tpu.memory_space<vmem>>, vector<2x8x128xf32>
    %46 = arith.subf %40, %45 : vector<2x8x128xf32>
    %47 = arith.mulf %43, %43 : vector<2x8x128xf32>
    %cst_26 = arith.constant dense<0.000000e+00> : vector<2x128xf32>
    %48 = vector.multi_reduction <add>, %47, %cst_26 [1] : vector<2x8x128xf32> to vector<2x128xf32>
    %49 = arith.mulf %46, %46 : vector<2x8x128xf32>
    %cst_27 = arith.constant dense<0.000000e+00> : vector<2x128xf32>
    %50 = vector.multi_reduction <add>, %49, %cst_27 [1] : vector<2x8x128xf32> to vector<2x128xf32>
    %51 = arith.addf %35, %48 : vector<2x128xf32>
    %52 = arith.addf %36, %50 : vector<2x128xf32>
    %c3_i32 = arith.constant 3 : i32
    %c8_i32_28 = arith.constant 8 : i32
    %53 = arith.muli %c3_i32, %c8_i32_28 : i32
    %54 = tpu.assume_multiple %53, 8 : i32
    %c0_29 = arith.constant 0 : index
    %55 = arith.index_cast %54 : i32 to index
    %c0_30 = arith.constant 0 : index
    %56 = vector.load %arg3[%c0_29, %55, %c0_30] : memref<2x32x128xf32, #tpu.memory_space<vmem>>, vector<2x8x128xf32>
    %c0_31 = arith.constant 0 : index
    %57 = arith.index_cast %54 : i32 to index
    %c0_32 = arith.constant 0 : index
    %58 = vector.load %arg4[%c0_31, %57, %c0_32] : memref<2x32x128xf32, #tpu.memory_space<vmem>>, vector<2x8x128xf32>
    %59 = arith.subf %56, %58 : vector<2x8x128xf32>
    %c0_33 = arith.constant 0 : index
    %60 = arith.index_cast %54 : i32 to index
    %c0_34 = arith.constant 0 : index
    %61 = vector.load %arg5[%c0_33, %60, %c0_34] : memref<2x32x128xf32, #tpu.memory_space<vmem>>, vector<2x8x128xf32>
    %62 = arith.subf %56, %61 : vector<2x8x128xf32>
    %63 = arith.mulf %59, %59 : vector<2x8x128xf32>
    %cst_35 = arith.constant dense<0.000000e+00> : vector<2x128xf32>
    %64 = vector.multi_reduction <add>, %63, %cst_35 [1] : vector<2x8x128xf32> to vector<2x128xf32>
    %65 = arith.mulf %62, %62 : vector<2x8x128xf32>
    %cst_36 = arith.constant dense<0.000000e+00> : vector<2x128xf32>
    %66 = vector.multi_reduction <add>, %65, %cst_36 [1] : vector<2x8x128xf32> to vector<2x128xf32>
    %67 = arith.addf %51, %64 : vector<2x128xf32>
    %68 = arith.addf %52, %66 : vector<2x128xf32>
    %c4_i32 = arith.constant 4 : i32
    %c0_37 = arith.constant 0 : index
    %c0_38 = arith.constant 0 : index
    %69 = vector.load %arg8[%c0_37, %c0_38] : memref<2x128xf32, #tpu.memory_space<vmem>>, vector<2x128xf32>
    %70 = arith.minimumf %69, %67 : vector<2x128xf32>
    %c0_39 = arith.constant 0 : index
    %c0_40 = arith.constant 0 : index
    %71 = vector.load %arg8[%c0_39, %c0_40] : memref<2x128xf32, #tpu.memory_space<vmem>>, vector<2x128xf32>
    tpu.vector_store %arg8[%c0_39, %c0_40], %70 {strides = array<i32>} : memref<2x128xf32, #tpu.memory_space<vmem>>, vector<2x128xf32>,
    %c0_41 = arith.constant 0 : index
    %c0_42 = arith.constant 0 : index
    %72 = vector.load %arg9[%c0_41, %c0_42] : memref<2x128xf32, #tpu.memory_space<vmem>>, vector<2x128xf32>
    %73 = arith.maximumf %72, %68 : vector<2x128xf32>
    %c0_43 = arith.constant 0 : index
    %c0_44 = arith.constant 0 : index
    %74 = vector.load %arg9[%c0_43, %c0_44] : memref<2x128xf32, #tpu.memory_space<vmem>>, vector<2x128xf32>
    tpu.vector_store %arg9[%c0_43, %c0_44], %73 {strides = array<i32>} : memref<2x128xf32, #tpu.memory_space<vmem>>, vector<2x128xf32>,
    %c0_i32_45 = arith.constant 0 : i32
    %75 = arith.cmpi eq, %arg2, %c0_i32_45 : i32
    %76 = arith.extui %75 : i1 to i32
    %c0_i32_46 = arith.constant 0 : i32
    %77 = arith.cmpi ne, %76, %c0_i32_46 : i32
    scf.if %77 {
      %c0_47 = arith.constant 0 : index
      %c0_48 = arith.constant 0 : index
      %78 = vector.load %arg8[%c0_47, %c0_48] : memref<2x128xf32, #tpu.memory_space<vmem>>, vector<2x128xf32>
      %cst_49 = arith.constant dense<0x7F800000> : vector<2xf32>
      %79 = vector.multi_reduction <minimumf>, %78, %cst_49 [1] : vector<2x128xf32> to vector<2xf32>
      %80 = vector.shape_cast %79 : vector<2xf32> to vector<2x1xf32>
      %81 = vector.shape_cast %80 : vector<2x1xf32> to vector<1x2x1xf32>
      %c0_50 = arith.constant 0 : index
      %c0_51 = arith.constant 0 : index
      %c0_52 = arith.constant 0 : index
      %82 = vector.load %arg6[%c0_50, %c0_51, %c0_52] : memref<1x2x1xf32, #tpu.memory_space<vmem>>, vector<1x2x1xf32>
      tpu.vector_store %arg6[%c0_50, %c0_51, %c0_52], %81 {strides = array<i32>} : memref<1x2x1xf32, #tpu.memory_space<vmem>>, vector<1x2x1xf32>,
      %c0_53 = arith.constant 0 : index
      %c0_54 = arith.constant 0 : index
      %83 = vector.load %arg9[%c0_53, %c0_54] : memref<2x128xf32, #tpu.memory_space<vmem>>, vector<2x128xf32>
      %cst_55 = arith.constant dense<0xFF800000> : vector<2xf32>
      %84 = vector.multi_reduction <maximumf>, %83, %cst_55 [1] : vector<2x128xf32> to vector<2xf32>
      %85 = vector.shape_cast %84 : vector<2xf32> to vector<2x1xf32>
      %86 = vector.shape_cast %85 : vector<2x1xf32> to vector<1x2x1xf32>
      %c0_56 = arith.constant 0 : index
      %c0_57 = arith.constant 0 : index
      %c0_58 = arith.constant 0 : index
      %87 = vector.load %arg7[%c0_56, %c0_57, %c0_58] : memref<1x2x1xf32, #tpu.memory_space<vmem>>, vector<1x2x1xf32>
      tpu.vector_store %arg7[%c0_56, %c0_57, %c0_58], %86 {strides = array<i32>} : memref<1x2x1xf32, #tpu.memory_space<vmem>>, vector<1x2x1xf32>,
    } else {
    }
    return
  }
  func.func @transform_0(%arg0: i32, %arg1: i32, %arg2: i32) -> (i32, i32, i32) {
    %c1_i32 = arith.constant 1 : i32
    %0 = arith.muli %arg0, %c1_i32 : i32
    %1 = arith.addi %0, %arg2 : i32
    %c0_i32 = arith.constant 0 : i32
    %c0_i32_0 = arith.constant 0 : i32
    return %arg1, %c0_i32, %1 : i32, i32, i32
  }
  func.func @transform_1(%arg0: i32, %arg1: i32, %arg2: i32) -> (i32, i32, i32) {
    %c1_i32 = arith.constant 1 : i32
    %0 = arith.muli %arg0, %c1_i32 : i32
    %1 = arith.addi %0, %arg2 : i32
    %c0_i32 = arith.constant 0 : i32
    %c0_i32_0 = arith.constant 0 : i32
    return %arg1, %c0_i32, %1 : i32, i32, i32
  }
  func.func @transform_2(%arg0: i32, %arg1: i32, %arg2: i32) -> (i32, i32, i32) {
    %c1_i32 = arith.constant 1 : i32
    %0 = arith.muli %arg0, %c1_i32 : i32
    %1 = arith.addi %0, %arg2 : i32
    %c0_i32 = arith.constant 0 : i32
    %c0_i32_0 = arith.constant 0 : i32
    return %arg1, %c0_i32, %1 : i32, i32, i32
  }
  func.func @transform_3(%arg0: i32, %arg1: i32, %arg2: i32) -> (i32, i32, i32) {
    %c0_i32 = arith.constant 0 : i32
    %c0_i32_0 = arith.constant 0 : i32
    return %arg0, %arg1, %c0_i32 : i32, i32, i32
  }
  func.func @transform_4(%arg0: i32, %arg1: i32, %arg2: i32) -> (i32, i32, i32) {
    %c0_i32 = arith.constant 0 : i32
    %c0_i32_0 = arith.constant 0 : i32
    return %arg0, %arg1, %c0_i32 : i32, i32, i32
  }
}

</mosaic_0001>

<bundles_post_ra>
// kernel: tpu_custom_call.1
= control target key start
LH: loop header
LB: loop body
LE: loop exit
PB: predicated region body
PF: predicated region fallthrough
CT: control target
= control target key end

     0   :  { %10 = vsyncpa [#allocation5], 0  ;;  %s495_s0 = inlined_call_operand.hbm [shape: f32[2,32,128], index: 0, kind: input, shape index: {}]   ;;  %s496_s1 = inlined_call_operand.hbm [shape: f32[2,32,128], index: 1, kind: input, shape index: {}]   ;;  %s497_s2 = inlined_call_operand.hbm [shape: f32[2,32,128], index: 2, kind: input, shape index: {}]   ;;  %s498_s3 = inlined_call_operand.vmem [shape: f32[1,2,1], index: 3, kind: output, shape index: {0}]   ;;  %s499_s4 = inlined_call_operand.vmem [shape: f32[1,2,1], index: 4, kind: output, shape index: {1}]  }
   0x1   :  { %11 = vsyncpa [#allocation7], 0  ;;  %s369_s15 = smov [#allocation6]   ;;  %s370_s17 = smov [#allocation4]  }
   0x2   :  { %s35_s16 = sshll.u32 %s369_s15, 4  ;;  %s20_s18 = sshll.u32 %s370_s17, 4  ;;  %s36_s16 = int_to_ptr.vmem [resolvable:$true] %s35_s16  ;;  %s401_s18 = int_to_ptr.vmem [resolvable:$true] %s20_s18 }
   0x3   :  { %s299_s21 = scalar_lea.hbm %s496_s1, 1024 }
   0x4   :  { %p300_p0 = scmp.ne.s32.totalorder %s496_s1, %s299_s21  ;;  %p303_p1 = scmp.lt.u32.totalorder %s299_s21, %s496_s1 }
   0x6   :  { %p305_p2 = pnand %p303_p1, %p300_p0 }
   0x8   :  { %308 = shalt.err (!%p305_p2)
}
   0x9   :  { %s309_s26 = scalar_lea.vmem %s36_s16, 1024  ;;  %p314_p4 = scmp.lt.s32.totalorder %s36_s16, %s36_s16 }
   0xa   :  { %p310_p3 = scmp.ne.s32.totalorder %s36_s16, %s309_s26  ;;  %p315_p5 = scmp.lt.s32.totalorder %s309_s26, %s309_s26 }
   0xc   :  { %p316_p6 = por %p315_p5, %p314_p4 }
   0xe   :  { %p317_p7 = pnand %p316_p6, %p310_p3 }
  0x10   :  { %320 = shalt.err (!%p317_p7)
}
  0x11   :  { %s371_s27 = smov 128   ;;  %s372_s28 = smov 8  }
  0x12   :  { %41 = dma.hbm_to_vmem [thread:$0]  %s496_s1, 1024, %s36_s16, [#allocation7], %s371_s27, %s371_s27, %s372_s28  }
  0x13   :  { %s321_s7 = scalar_lea.hbm %s495_s0, 1024 }
  0x14   :  { %p322_p8 = scmp.ne.s32.totalorder %s495_s0, %s321_s7  ;;  %p325_p9 = scmp.lt.u32.totalorder %s321_s7, %s495_s0 }
  0x16   :  { %p327_p10 = pnand %p325_p9, %p322_p8 }
  0x18   :  { %330 = shalt.err (!%p327_p10)
}
  0x19   :  { %s331_s12 = scalar_lea.vmem %s401_s18, 1024  ;;  %p336_p12 = scmp.lt.s32.totalorder %s401_s18, %s401_s18 }
  0x1a   :  { %p332_p11 = scmp.ne.s32.totalorder %s401_s18, %s331_s12  ;;  %p337_p13 = scmp.lt.s32.totalorder %s331_s12, %s331_s12 }
  0x1c   :  { %p338_p0 = por %p337_p13, %p336_p12 }
  0x1e   :  { %p339_p1 = pnand %p338_p0, %p332_p11 }
  0x20   :  { %342 = shalt.err (!%p339_p1)
}
  0x21   :  { %26 = dma.hbm_to_vmem [thread:$0]  %s495_s0, 1024, %s401_s18, [#allocation5], %s371_s27, %s371_s27, %s372_s28  }
  0x22   :  { %s373_s14 = smov [#allocation8]   ;;  %s343_s19 = scalar_lea.hbm %s497_s2, 1024 }
  0x23   :  { %s50_s15 = sshll.u32 %s373_s14, 4  ;;  %p344_p2 = scmp.ne.s32.totalorder %s497_s2, %s343_s19  ;;  %s51_s15 = int_to_ptr.vmem [resolvable:$true] %s50_s15 }
  0x24   :  { %p347_p3 = scmp.lt.u32.totalorder %s343_s19, %s497_s2 }
  0x26   :  { %p349_p4 = pnand %p347_p3, %p344_p2 }
  0x28   :  { %352 = shalt.err (!%p349_p4)
}
  0x29   :  { %s353_s24 = scalar_lea.vmem %s51_s15, 1024  ;;  %p358_p6 = scmp.lt.s32.totalorder %s51_s15, %s51_s15 }
  0x2a   :  { %p354_p5 = scmp.ne.s32.totalorder %s51_s15, %s353_s24  ;;  %p359_p7 = scmp.lt.s32.totalorder %s353_s24, %s353_s24 }
  0x2c   :  { %p360_p8 = por %p359_p7, %p358_p6 }
  0x2e   :  { %p361_p9 = pnand %p360_p8, %p354_p5 }
  0x30   :  { %364 = shalt.err (!%p361_p9)
}
  0x31   :  { %56 = dma.hbm_to_vmem [thread:$0]  %s497_s2, 1024, %s51_s15, [#allocation7], %s371_s27, %s371_s27, %s372_s28  }
  0x32   :  { %365 = dma.done.wait [#allocation5], 1024  }
  0x33   :  { %366 = vsyncadd [#allocation5], 4294966272 }
  0x34   :  { %367 = dma.done.wait [#allocation7], 2048  }
  0x35   :  { %368 = vsyncadd [#allocation7], 4294965248  ;;  %v374_v0 = vmov inf   ;;  %v375_v1 = vmov -inf   ;;  %v453_v2 = vld [vmem:[#allocation4] sm:$0xff]  ;;  %v458_v7 = vld [vmem:[#allocation4 + $0x8] sm:$0xff] }
  0x36   :  { %73 = vst [vmem:[#allocation2] sm:$0x3] %v374_v0  ;;  %74 = vst [vmem:[#allocation3] sm:$0x3] %v375_v1  ;;  %v455_v3 = vld [vmem:[#allocation4 + $0x20] sm:$0xff]  ;;  %v460_v8 = vld [vmem:[#allocation4 + $0x28] sm:$0xff] }
  0x37   :  { %v77_v4 = vld [vmem:[#allocation6] sm:$0xff]  ;;  %v121_v10 = vld [vmem:[#allocation6 + $0x8] sm:$0xff]  ;;  %v463_v12 = vld [vmem:[#allocation4 + $0x10] sm:$0xff]  ;;  %vm255_vm0 = vcmask 1041409   ;;  %vm271_vm1 = vcmask 1041408   ;;  %vm275_vm2 = vcmask 1024  }
  0x38   :  { %v78_v5 = vld [vmem:[#allocation6 + $0x20] sm:$0xff]  ;;  %v79_v6 = vsub.f32 %v453_v2, %v77_v4  ;;  %v122_v11 = vld [vmem:[#allocation6 + $0x28] sm:$0xff]  ;;  %v123_v14 = vsub.f32 %v458_v7, %v121_v10  ;;  %v467_v16 = vld [vmem:[#allocation4 + $0x30] sm:$0xff] }
  0x39   :  { %v80_v9 = vsub.f32 %v455_v3, %v78_v5  ;;  %v124_v15 = vsub.f32 %v460_v8, %v122_v11  ;;  %v166_v17 = vld [vmem:[#allocation6 + $0x10] sm:$0xff]  ;;  %v471_v22 = vld [vmem:[#allocation4 + $0x18] sm:$0xff]  ;;  %v81_v4 = vld [vmem:[#allocation8] sm:$0xff] }
  0x3a   :  { %v85_v13 = vmul.f32 %v79_v6, %v79_v6  ;;  %v167_v18 = vld [vmem:[#allocation6 + $0x30] sm:$0xff]  ;;  %v168_v20 = vsub.f32 %v463_v12, %v166_v17  ;;  %v473_v23 = vld [vmem:[#allocation4 + $0x38] sm:$0xff]  ;;  %v130_v26 = vmul.f32 %v123_v14, %v123_v14  ;;  %v82_v11 = vld [vmem:[#allocation8 + $0x20] sm:$0xff] }
  0x3b   :  { %v86_v19 = vmul.f32 %v80_v9, %v80_v9  ;;  %v169_v21 = vsub.f32 %v467_v16, %v167_v18  ;;  %v211_v24 = vld [vmem:[#allocation6 + $0x18] sm:$0xff]  ;;  %v131_v27 = vmul.f32 %v124_v15, %v124_v15 }
  0x3c   :  { %v87_v25 = vrot.slane %v85_v13, 4  ;;  %v212_v28 = vld [vmem:[#allocation6 + $0x38] sm:$0xff]  ;;  %v213_v29 = vsub.f32 %v471_v22, %v211_v24  ;;  %v175_v31 = vmul.f32 %v168_v20, %v168_v20  ;;  %v132_v35 = vrot.slane %v130_v26, 4  ;;  %v126_v24 = vld [vmem:[#allocation8 + $0x8] sm:$0xff] }
  0x3d   :  { %v93_v30 = vrot.slane %v86_v19, 4  ;;  %v176_v32 = vmul.f32 %v169_v21, %v169_v21  ;;  %v214_v33 = vsub.f32 %v473_v23, %v212_v28  ;;  %v138_v36 = vrot.slane %v131_v27, 4 }
  0x3e   :  { %v88_v34 = vadd.f32 %v87_v25, %v85_v13  ;;  %v220_v37 = vmul.f32 %v213_v29, %v213_v29  ;;  %v177_v39 = vrot.slane %v175_v31, 4  ;;  %v133_v43 = vadd.f32 %v132_v35, %v130_v26  ;;  %v127_v25 = vld [vmem:[#allocation8 + $0x28] sm:$0xff]  ;;  %v172_v35 = vld [vmem:[#allocation8 + $0x30] sm:$0xff] }
  0x3f   :  { %v94_v38 = vadd.f32 %v93_v30, %v86_v19  ;;  %v183_v40 = vrot.slane %v176_v32, 4  ;;  %v221_v41 = vmul.f32 %v214_v33, %v214_v33  ;;  %v139_v44 = vadd.f32 %v138_v36, %v131_v27  ;;  %v171_v30 = vld [vmem:[#allocation8 + $0x10] sm:$0xff] }
  0x40   :  { %v89_v42 = vrot.slane %v88_v34, 2  ;;  %v222_v45 = vrot.slane %v220_v37, 4  ;;  %v178_v47 = vadd.f32 %v177_v39, %v175_v31  ;;  %v134_v51 = vrot.slane %v133_v43, 2 }
  0x41   :  { %v95_v46 = vrot.slane %v94_v38, 2  ;;  %v184_v48 = vadd.f32 %v183_v40, %v176_v32  ;;  %v228_v49 = vrot.slane %v221_v41, 4  ;;  %v140_v52 = vrot.slane %v139_v44, 2 }
  0x42   :  { %v90_v50 = vadd.f32 %v89_v42, %v88_v34  ;;  %v223_v53 = vadd.f32 %v222_v45, %v220_v37  ;;  %v179_v55 = vrot.slane %v178_v47, 2  ;;  %v135_v59 = vadd.f32 %v134_v51, %v133_v43 }
  0x43   :  { %v96_v54 = vadd.f32 %v95_v46, %v94_v38  ;;  %v185_v56 = vrot.slane %v184_v48, 2  ;;  %v229_v57 = vadd.f32 %v228_v49, %v221_v41  ;;  %v141_v60 = vadd.f32 %v140_v52, %v139_v44  ;;  %v216_v46 = vld [vmem:[#allocation8 + $0x18] sm:$0xff] }
  0x44   :  { %v91_v58 = vrot.slane %v90_v50, 1  ;;  %v224_v61 = vrot.slane %v223_v53, 2  ;;  %v180_v63 = vadd.f32 %v179_v55, %v178_v47  ;;  %v136_v6 = vrot.slane %v135_v59, 1  ;;  %v252_v49 = vld [vmem:[#allocation2] sm:$0x3] }
  0x45   :  { %v97_v62 = vrot.slane %v96_v54, 1  ;;  %v186_v0 = vadd.f32 %v185_v56, %v184_v48  ;;  %v230_v1 = vrot.slane %v229_v57, 2  ;;  %v142_v9 = vrot.slane %v141_v60, 1 }
  0x46   :  { %v92_v5 = vadd.f32 %v91_v58, %v90_v50  ;;  %v225_v10 = vadd.f32 %v224_v61, %v223_v53  ;;  %v181_v14 = vrot.slane %v180_v63, 1  ;;  %v137_v18 = vadd.f32 %v136_v6, %v135_v59 }
  0x47   :  { %v98_v13 = vadd.f32 %v97_v62, %v96_v54  ;;  %v187_v15 = vrot.slane %v186_v0, 1  ;;  %v231_v17 = vadd.f32 %v230_v1, %v229_v57  ;;  %v143_v19 = vadd.f32 %v142_v9, %v141_v60  ;;  %v217_v54 = vld [vmem:[#allocation8 + $0x38] sm:$0xff] }
  0x48   :  { %v226_v20 = vrot.slane %v225_v10, 1  ;;  %v83_v21 = vsub.f32 %v453_v2, %v81_v4  ;;  %v182_v26 = vadd.f32 %v181_v14, %v180_v63  ;;  %v84_v29 = vsub.f32 %v455_v3, %v82_v11 }
  0x49   :  { %v188_v27 = vadd.f32 %v187_v15, %v186_v0  ;;  %v232_v28 = vrot.slane %v231_v17, 1  ;;  %v158_v31 = vadd.f32 %v137_v18, %v92_v5  ;;  %v159_v32 = vadd.f32 %v143_v19, %v98_v13 }
  0x4a   :  { %v227_v33 = vadd.f32 %v226_v20, %v225_v10  ;;  %v99_v34 = vmul.f32 %v83_v21, %v83_v21  ;;  %v100_v37 = vmul.f32 %v84_v29, %v84_v29  ;;  %v128_v38 = vsub.f32 %v458_v7, %v126_v24 }
  0x4b   :  { %v233_v36 = vadd.f32 %v232_v28, %v231_v17  ;;  %v129_v39 = vsub.f32 %v460_v8, %v127_v25  ;;  %v203_v2 = vadd.f32 %v182_v26, %v158_v31  ;;  %v204_v40 = vadd.f32 %v188_v27, %v159_v32 }
  0x4c   :  { %v101_v41 = vrot.slane %v99_v34, 4  ;;  %v173_v42 = vsub.f32 %v463_v12, %v171_v30  ;;  %v107_v43 = vrot.slane %v100_v37, 4  ;;  %v144_v44 = vmul.f32 %v128_v38, %v128_v38 }
  0x4d   :  { %v145_v3 = vmul.f32 %v129_v39, %v129_v39  ;;  %v174_v45 = vsub.f32 %v467_v16, %v172_v35  ;;  %v248_v47 = vadd.f32 %v227_v33, %v203_v2  ;;  %v249_v48 = vadd.f32 %v233_v36, %v204_v40 }
  0x4e   :  { %v102_v50 = vadd.f32 %v101_v41, %v99_v34  ;;  %v189_v51 = vmul.f32 %v173_v42, %v173_v42  ;;  %v108_v52 = vadd.f32 %v107_v43, %v100_v37  ;;  %v146_v7 = vrot.slane %v144_v44, 4 }
  0x4f   :  { %v152_v53 = vrot.slane %v145_v3, 4  ;;  %v190_v8 = vmul.f32 %v174_v45, %v174_v45  ;;  %v256_v55 = vsel %vm255_vm0, %v249_v48, %v248_v47  ;;  %v218_v57 = vsub.f32 %v471_v22, %v216_v46 }
  0x50   :  { %v103_v56 = vrot.slane %v102_v50, 2  ;;  %v191_v12 = vrot.slane %v189_v51, 4  ;;  %v258_v58 = vmin.f32 %v252_v49, %v256_v55  ;;  %v109_v59 = vrot.slane %v108_v52, 2  ;;  %v260_v49 = vld [vmem:[#allocation3] sm:$0x3] }
  0x51   :  { %v147_v16 = vadd.f32 %v146_v7, %v144_v44  ;;  %v153_v60 = vadd.f32 %v152_v53, %v145_v3  ;;  %v197_v63 = vrot.slane %v190_v8, 4  ;;  %v219_v0 = vsub.f32 %v473_v23, %v217_v54 }
  0x52   :  { %v104_v61 = vadd.f32 %v103_v56, %v102_v50  ;;  %v192_v62 = vadd.f32 %v191_v12, %v189_v51  ;;  %259 = vst [vmem:[#allocation2] sm:$0x3] %v258_v58  ;;  %v110_v1 = vadd.f32 %v109_v59, %v108_v52  ;;  %v234_v6 = vmul.f32 %v218_v57, %v218_v57 }
  0x53   :  { %v148_v4 = vrot.slane %v147_v16, 2  ;;  %v154_v5 = vrot.slane %v153_v60, 2  ;;  %v198_v11 = vadd.f32 %v197_v63, %v190_v8  ;;  %v235_v13 = vmul.f32 %v219_v0, %v219_v0 }
  0x54   :  { %v105_v9 = vrot.slane %v104_v61, 1  ;;  %v193_v10 = vrot.slane %v192_v62, 2  ;;  %v111_v14 = vrot.slane %v110_v1, 1  ;;  %v236_v17 = vrot.slane %v234_v6, 4 }
  0x55   :  { %v149_v22 = vadd.f32 %v148_v4, %v147_v16  ;;  %v155_v15 = vadd.f32 %v154_v5, %v153_v60  ;;  %v199_v20 = vrot.slane %v198_v11, 2  ;;  %v242_v21 = vrot.slane %v235_v13, 4 }
  0x56   :  { %v106_v18 = vadd.f32 %v105_v9, %v104_v61  ;;  %v194_v19 = vadd.f32 %v193_v10, %v192_v62  ;;  %v112_v24 = vadd.f32 %v111_v14, %v110_v1  ;;  %v237_v26 = vadd.f32 %v236_v17, %v234_v6 }
  0x57   :  { %v150_v25 = vrot.slane %v149_v22, 1  ;;  %v156_v23 = vrot.slane %v155_v15, 1  ;;  %v200_v28 = vadd.f32 %v199_v20, %v198_v11  ;;  %v243_v29 = vadd.f32 %v242_v21, %v235_v13 }
  0x58   :  { %v195_v27 = vrot.slane %v194_v19, 1  ;;  %v238_v32 = vrot.slane %v237_v26, 2 }
  0x59   :  { %v151_v30 = vadd.f32 %v150_v25, %v149_v22  ;;  %v157_v31 = vadd.f32 %v156_v23, %v155_v15  ;;  %v270_v33 = vld [vmem:[#allocation2] sm:$0x3]  ;;  %v201_v35 = vrot.slane %v200_v28, 1  ;;  %v244_v36 = vrot.slane %v243_v29, 2 }
  0x5a   :  { %v196_v34 = vadd.f32 %v195_v27, %v194_v19  ;;  %v272_v37 = vsel %vm271_vm1, %v270_v33, inf  ;;  %v239_v2 = vadd.f32 %v238_v32, %v237_v26 }
  0x5b   :  { %v160_v38 = vadd.f32 %v151_v30, %v106_v18  ;;  %v161_v39 = vadd.f32 %v157_v31, %v112_v24  ;;  %273 = vmin.xlane.f32.xlu0 %v272_v37  ;;  %v202_v40 = vadd.f32 %v201_v35, %v200_v28  ;;  %v245_v41 = vadd.f32 %v244_v36, %v243_v29 }
  0x5c   :  { %v240_v43 = vrot.slane %v239_v2, 1 }
  0x5d   :  { %v205_v42 = vadd.f32 %v196_v34, %v160_v38  ;;  %v206_v44 = vadd.f32 %v202_v40, %v161_v39  ;;  %v246_v3 = vrot.slane %v245_v41, 1 }
  0x5e   :  { %v241_v45 = vadd.f32 %v240_v43, %v239_v2 }
  0x5f   :  { %v247_v46 = vadd.f32 %v246_v3, %v245_v41 }
  0x60   :  { %v250_v47 = vadd.f32 %v241_v45, %v205_v42 }
  0x61   :  { %v251_v48 = vadd.f32 %v247_v46, %v206_v44 }
  0x63   :  { %v263_v50 = vsel %vm255_vm0, %v251_v48, %v250_v47 }
  0x64   :  { %v265_v51 = vmax.f32 %v260_v49, %v263_v50 }
  0x66   :  { %266 = vst [vmem:[#allocation3] sm:$0x3] %v265_v51 }
  0x6d   :  { %v277_v52 = vld [vmem:[#allocation3] sm:$0x3] }
  0x6e   :  { %v278_v7 = vsel %vm271_vm1, %v277_v52, -inf }
  0x6f   :  { %279 = vmax.xlane.f32.xlu0 %v278_v7 }
  0xe8   :  { %v274_v53 = vpop.xlane.xlu0 %273 }
  0xe9   :  { %276 = vst.msk [vmem:[%s498_s3] sm:$0x3] %vm275_vm2, %v274_v53 }
  0xfc   :  { %v280_v8 = vpop.xlane.xlu0 %279 }
  0xfd   :  { %281 = vst.msk [vmem:[%s499_s4] sm:$0x3] %vm275_vm2, %v280_v8 }
  0xfe   :  { %290 = vsyncpa [#allocation5], 1 }
  0xff   :  { %291 = vsyncpa [#allocation7], 1 }

</bundles_post_ra>
